<compile_context>
chip_gen: v7x
topology: tpu7x:2x2x1
jax: 0.10.0
libtpu: 0.0.40
codegen_flags: <defaults>
</compile_context>

<pallas_src>
import math
import functools

import jax
import jax.numpy as jnp
from jax import lax
from jax.experimental import pallas as pl
from jax.experimental.pallas import tpu as pltpu


# ----------------------------- hardware budgeting ---------------------------

def _vmem_limit_bytes():
    """Chip-aware scoped-VMEM budget (leave ~25% headroom for internal scratch)."""
    try:
        cap = pltpu.get_tpu_info().vmem_capacity_bytes
    except Exception:
        cap = 64 * 1024 * 1024          # conservative fallback (v7x-sized)
    return int(cap * 0.75)


def _row_tiling(m, cap):
    """Pick a power-of-two row tile (>=8, <=cap) and the padded row count it divides."""
    cands = [t for t in (512, 256, 128, 64, 32, 16, 8) if t <= cap]
    for t in cands:
        if m % t == 0:
            return t, m
    t = max(8, min(cands[0], pl.next_power_of_2(m)))
    return t, pl.cdiv(m, t) * t


def _const_spec(block_shape):
    """BlockSpec for a grid-invariant block: constant index map, single-buffered."""
    ndim = len(block_shape)
    idx = lambda *args: (0,) * ndim
    try:
        return pl.BlockSpec(block_shape, idx, pipeline_mode=pl.Buffered(1))
    except TypeError:  # older jax without pipeline_mode kwarg
        return pl.BlockSpec(block_shape, idx)


# ----------------------------- in-kernel helpers ----------------------------

def _ln_f32(x, g, b, eps):
    """Annotated-Transformer LayerNorm: unbiased std, eps added to std (f32 math)."""
    d = x.shape[-1]
    mean = jnp.mean(x, axis=-1, keepdims=True)
    var = jnp.sum((x - mean) ** 2, axis=-1, keepdims=True) / (d - 1)
    std = jnp.sqrt(var)
    return g * (x - mean) / (std + eps) + b


# ----------------------------- Pallas kernels ------------------------------

def ln_matmul_kernel(x_ref, g_ref, b_ref, w_ref, wb_ref, o_ref, *, eps):
    """out_tile = LN(x_tile) @ W + b   (fused QKV projection; W is bf16)."""
    x = x_ref[...].astype(jnp.float32)                        # (tm, D)
    xn = _ln_f32(x, g_ref[...].astype(jnp.float32),
                 b_ref[...].astype(jnp.float32), eps)
    y = jnp.dot(xn.astype(jnp.bfloat16), w_ref[...],
                preferred_element_type=jnp.float32) + wb_ref[...]
    o_ref[...] = y.astype(o_ref.dtype)


def attn_out_proj_kernel(qkv_ref, bias_ref, wo_ref, bo_ref, res_ref, o_ref,
                         *, num_heads, d_model):
    """Per batch: softmax(QK^T + bias)V for all heads, accumulated through Wo,
    plus bias and residual.

    qkv_ref : (1, S, 3D) bf16 block  [Q | K | V], 1/sqrt(dk) already in Q
    bias_ref: (1, 1, S)  additive mask bias (0 / -1e9), f32
    wo_ref  : (D, D)     bf16 output projection
    res_ref : (1, S, D)  residual (original x), f32
    o_ref   : (1, S, D)  lane-dense output slab
    """
    dk = d_model // num_heads
    qkv = qkv_ref[0]                                          # (S, 3D) bf16
    bias = bias_ref[0].astype(jnp.float32)                    # (1, S) -> broadcast rows
    wo = wo_ref[...]                                          # (D, D) bf16
    s_len = qkv.shape[0]

    # contract q's last dim against k's last dim -> no explicit transpose (MXU-direct)
    qk_dims = (((1,), (1,)), ((), ()))

    y = jnp.zeros((s_len, d_model), jnp.float32)
    for h in range(num_heads):                                # static unrolled loop
        q = qkv[:, h * dk:(h + 1) * dk]
        k = qkv[:, d_model + h * dk:d_model + (h + 1) * dk]
        v = qkv[:, 2 * d_model + h * dk:2 * d_model + (h + 1) * dk]
        s = lax.dot_general(q, k, qk_dims,
                            preferred_element_type=jnp.float32) + bias    # (S, S) f32
        m = jnp.max(s, axis=-1, keepdims=True)
        p = jnp.exp(s - m)
        p = p * pl.reciprocal(jnp.sum(p, axis=-1, keepdims=True), approx=True)
        head = jnp.dot(p.astype(jnp.bfloat16), v,
                       preferred_element_type=jnp.float32)                # (S, dk)
        # accumulate through Wo's row slice -> head live range ends here (no concat)
        y = y + jnp.dot(head.astype(jnp.bfloat16), wo[h * dk:(h + 1) * dk, :],
                        preferred_element_type=jnp.float32)

    y = y + bo_ref[...] + res_ref[0].astype(jnp.float32)
    o_ref[0] = y.astype(o_ref.dtype)
    # TODO(synk): for long S (>~2K), add a query-row grid axis and stream K/V tiles
    #             with a flash-style online softmax so the (S,S) scores never materialize.


def ln_ffn_residual_kernel(x_ref, g_ref, b_ref, w1_ref, b1_ref, w2_ref, b2_ref,
                           o_ref, *, eps):
    """out_tile = x_tile + relu(LN(x_tile) @ W1 + b1) @ W2 + b2 (hidden stays in VMEM)."""
    x = x_ref[...].astype(jnp.float32)                        # (tm, D)
    xn = _ln_f32(x, g_ref[...].astype(jnp.float32),
                 b_ref[...].astype(jnp.float32), eps)
    h = jnp.dot(xn.astype(jnp.bfloat16), w1_ref[...],
                preferred_element_type=jnp.float32) + b1_ref[...]
    h = jnp.maximum(h, 0.0)
    y = x + jnp.dot(h.astype(jnp.bfloat16), w2_ref[...],
                    preferred_element_type=jnp.float32) + b2_ref[...]
    o_ref[...] = y.astype(o_ref.dtype)
    # TODO(synk): for very large DFF, add a DFF grid axis with a (tm, D) f32 accumulator
    #             so W1/W2 residency stays bounded on v7x's 64 MiB VMEM.


# ----------------------------- wrappers -------------------------------------

def ln_matmul(x2d, gamma, beta, w_bf16, bias_f32, out_dtype, eps=1e-6):
    M, D = x2d.shape
    N = w_bf16.shape[1]
    vmem = _vmem_limit_bytes()
    cap = 512 if vmem >= 96 * 1024 * 1024 else 256
    tm, pm = _row_tiling(M, cap)
    xp = x2d if pm == M else jnp.pad(x2d, ((0, pm - M), (0, 0)))
    out = pl.pallas_call(
        functools.partial(ln_matmul_kernel, eps=eps),
        out_shape=jax.ShapeDtypeStruct((pm, N), out_dtype),
        grid=(pm // tm,),
        in_specs=[pl.BlockSpec((tm, D), lambda i: (i, 0)),
                  _const_spec((1, D)),
                  _const_spec((1, D)),
                  _const_spec((D, N)),
                  _const_spec((1, N))],
        out_specs=pl.BlockSpec((tm, N), lambda i: (i, 0)),
        compiler_params=pltpu.CompilerParams(
            dimension_semantics=("parallel",),
            vmem_limit_bytes=vmem),
    )(xp, gamma.reshape(1, D), beta.reshape(1, D), w_bf16, bias_f32.reshape(1, N))
    return out if pm == M else out[:M]


def attention_out_proj(qkv, mask_bias, wo_bf16, bo, residual, num_heads):
    B, S, threeD = qkv.shape
    D = threeD // 3
    vmem = _vmem_limit_bytes()
    return pl.pallas_call(
        functools.partial(attn_out_proj_kernel, num_heads=num_heads, d_model=D),
        out_shape=jax.ShapeDtypeStruct((B, S, D), residual.dtype),
        grid=(B,),
        in_specs=[pl.BlockSpec((1, S, 3 * D), lambda b: (b, 0, 0)),
                  pl.BlockSpec((1, 1, S), lambda b: (b, 0, 0)),
                  _const_spec((D, D)),
                  _const_spec((1, D)),
                  pl.BlockSpec((1, S, D), lambda b: (b, 0, 0))],
        out_specs=pl.BlockSpec((1, S, D), lambda b: (b, 0, 0)),
        compiler_params=pltpu.CompilerParams(
            dimension_semantics=("parallel",),
            vmem_limit_bytes=vmem),
    )(qkv, mask_bias, wo_bf16, bo.reshape(1, D), residual)


def ln_ffn_residual(x2d, gamma, beta, w1_bf16, b1, w2_bf16, b2, eps=1e-6):
    M, D = x2d.shape
    DFF = w1_bf16.shape[1]
    vmem = _vmem_limit_bytes()
    cap = 512 if vmem >= 96 * 1024 * 1024 else 256
    tm, pm = _row_tiling(M, cap)
    xp = x2d if pm == M else jnp.pad(x2d, ((0, pm - M), (0, 0)))
    out = pl.pallas_call(
        functools.partial(ln_ffn_residual_kernel, eps=eps),
        out_shape=jax.ShapeDtypeStruct((pm, D), x2d.dtype),
        grid=(pm // tm,),
        in_specs=[pl.BlockSpec((tm, D), lambda i: (i, 0)),
                  _const_spec((1, D)),
                  _const_spec((1, D)),
                  _const_spec((D, DFF)),
                  _const_spec((1, DFF)),
                  _const_spec((DFF, D)),
                  _const_spec((1, D))],
        out_specs=pl.BlockSpec((tm, D), lambda i: (i, 0)),
        compiler_params=pltpu.CompilerParams(
            dimension_semantics=("parallel",),
            vmem_limit_bytes=vmem),
    )(xp, gamma.reshape(1, D), beta.reshape(1, D), w1_bf16, b1.reshape(1, DFF),
      w2_bf16, b2.reshape(1, D))
    return out if pm == M else out[:M]


def prepare_params(params, num_heads):
    """One-time weight prep: fuse QKV, fold 1/sqrt(dk) into Q, cast MXU weights to bf16."""
    D = params["wq"].shape[0]
    dk = D // num_heads
    scale = 1.0 / math.sqrt(dk)
    wqkv = jnp.concatenate(
        [params["wq"] * scale, params["wk"], params["wv"]], axis=1)      # (D, 3D)
    bqkv = jnp.concatenate(
        [params["bq"] * scale, params["bk"], params["bv"]], axis=0)      # (3D,)
    return {
        "ln0_g": params["ln0_g"], "ln0_b": params["ln0_b"],
        "ln1_g": params["ln1_g"], "ln1_b": params["ln1_b"],
        "wqkv": wqkv.astype(jnp.bfloat16), "bqkv": bqkv.astype(jnp.float32),
        "wo": params["wo"].astype(jnp.bfloat16), "bo": params["bo"].astype(jnp.float32),
        "w1": params["w1"].astype(jnp.bfloat16), "b1": params["b1"].astype(jnp.float32),
        "w2": params["w2"].astype(jnp.bfloat16), "b2": params["b2"].astype(jnp.float32),
    }


def encoder_layer_forward(x, mask, prep, num_heads):
    """x: (B, S, D) float32;  mask: (B, 1, S) int32;  prep: prepare_params output."""
    B, S, D = x.shape

    # Additive mask bias computed once (replaces per-step compare + select).
    mask_bias = jnp.where(mask == 0, jnp.float32(-1e9), jnp.float32(0.0))  # (B,1,S)

    # ---- sublayer 0: x = x + Wo(attn(LN(x))) ----
    x2d = x.reshape(B * S, D)
    qkv = ln_matmul(x2d, prep["ln0_g"], prep["ln0_b"], prep["wqkv"], prep["bqkv"],
                    out_dtype=jnp.bfloat16)                                # (B*S, 3D)
    x = attention_out_proj(qkv.reshape(B, S, 3 * D), mask_bias,
                           prep["wo"], prep["bo"], x, num_heads)           # (B, S, D)

    # ---- sublayer 1: x = x + FFN(LN(x)) ----
    out2d = ln_ffn_residual(x.reshape(B * S, D),
                            prep["ln1_g"], prep["ln1_b"],
                            prep["w1"], prep["b1"],
                            prep["w2"], prep["b2"])
    return out2d.reshape(B, S, D)


# ----------------------------- main ------------------------------------------

if __name__ == "__main__":
    B, S, D, H, DFF = 2, 8, 32, 4, 64

    key = jax.random.PRNGKey(0)
    keys = jax.random.split(key, 16)

    def init(k, shape, scale=0.1):
        return scale * jax.random.normal(k, shape, dtype=jnp.float32)

    params = {
        "ln0_g": jnp.ones((D,), jnp.float32),
        "ln0_b": jnp.zeros((D,), jnp.float32),
        "ln1_g": jnp.ones((D,), jnp.float32),
        "ln1_b": jnp.zeros((D,), jnp.float32),
        "wq": init(keys[0], (D, D)), "bq": init(keys[1], (D,)),
        "wk": init(keys[2], (D, D)), "bk": init(keys[3], (D,)),
        "wv": init(keys[4], (D, D)), "bv": init(keys[5], (D,)),
        "wo": init(keys[6], (D, D)), "bo": init(keys[7], (D,)),
        "w1": init(keys[8], (D, DFF)), "b1": init(keys[9], (DFF,)),
        "w2": init(keys[10], (DFF, D)), "b2": init(keys[11], (D,)),
    }

    x = jax.random.normal(keys[12], (B, S, D), dtype=jnp.float32)
    # padding-style mask: last two key positions of batch 1 masked out
    mask = jnp.ones((B, 1, S), dtype=jnp.int32)
    mask = mask.at[1, 0, S - 2:].set(0)

    prep = prepare_params(params, num_heads=H)   # one-time weight prep (not per-forward)
    out = encoder_layer_forward(x, mask, prep, num_heads=H)
    jax.block_until_ready(out)
    assert out.shape == (B, S, D)
    assert bool(jnp.all(jnp.isfinite(out)))
    print("KERNEL_OK")
</pallas_src>

<mosaic_0001>
module attributes {stable_mosaic.version = 11 : i64} {
  func.func @ln_matmul_kernel(%arg0: i32, %arg1: memref<16x32xf32, #tpu.memory_space<vmem>>, %arg2: memref<1x32xf32, #tpu.memory_space<vmem>>, %arg3: memref<1x32xf32, #tpu.memory_space<vmem>>, %arg4: memref<32x96xbf16, #tpu.memory_space<vmem>>, %arg5: memref<1x96xf32, #tpu.memory_space<vmem>>, %arg6: memref<16x96xbf16, #tpu.memory_space<vmem>>) attributes {dimension_semantics = [#tpu.dimension_semantics<parallel>], iteration_bounds = array<i64: 1>, scalar_prefetch = 0 : i64, scratch_operands = 0 : i64, tpu.core_type = #tpu.core_type<tc>, window_params = [{transform_indices = @transform_0, window_bounds = array<i64: 16, 32>}, {pipeline_mode = #tpu.pipeline_mode<synchronous>, transform_indices = @transform_1, window_bounds = array<i64: 1, 32>}, {pipeline_mode = #tpu.pipeline_mode<synchronous>, transform_indices = @transform_2, window_bounds = array<i64: 1, 32>}, {pipeline_mode = #tpu.pipeline_mode<synchronous>, transform_indices = @transform_3, window_bounds = array<i64: 32, 96>}, {pipeline_mode = #tpu.pipeline_mode<synchronous>, transform_indices = @transform_4, window_bounds = array<i64: 1, 96>}, {transform_indices = @transform_5, window_bounds = array<i64: 16, 96>}]} {
    %c0 = arith.constant 0 : index
    %c0_0 = arith.constant 0 : index
    %0 = vector.load %arg1[%c0, %c0_0] : memref<16x32xf32, #tpu.memory_space<vmem>>, vector<16x32xf32>
    %c0_1 = arith.constant 0 : index
    %c0_2 = arith.constant 0 : index
    %1 = vector.load %arg2[%c0_1, %c0_2] : memref<1x32xf32, #tpu.memory_space<vmem>>, vector<1x32xf32>
    %c0_3 = arith.constant 0 : index
    %c0_4 = arith.constant 0 : index
    %2 = vector.load %arg3[%c0_3, %c0_4] : memref<1x32xf32, #tpu.memory_space<vmem>>, vector<1x32xf32>
    %cst = arith.constant dense<0.000000e+00> : vector<16xf32>
    %3 = vector.multi_reduction <add>, %0, %cst [1] : vector<16x32xf32> to vector<16xf32>
    %4 = vector.shape_cast %3 : vector<16xf32> to vector<16x1xf32>
    %cst_5 = arith.constant 3.200000e+01 : f32
    %5 = vector.broadcast %cst_5 : f32 to vector<16x1xf32>
    %6 = arith.divf %4, %5 : vector<16x1xf32>
    %7 = vector.broadcast %6 : vector<16x1xf32> to vector<16x32xf32>
    %8 = arith.subf %0, %7 : vector<16x32xf32>
    %9 = arith.mulf %8, %8 : vector<16x32xf32>
    %cst_6 = arith.constant dense<0.000000e+00> : vector<16xf32>
    %10 = vector.multi_reduction <add>, %9, %cst_6 [1] : vector<16x32xf32> to vector<16xf32>
    %11 = vector.shape_cast %10 : vector<16xf32> to vector<16x1xf32>
    %cst_7 = arith.constant 3.100000e+01 : f32
    %12 = vector.broadcast %cst_7 : f32 to vector<16x1xf32>
    %13 = arith.divf %11, %12 : vector<16x1xf32>
    %14 = math.sqrt %13 : vector<16x1xf32>
    %15 = vector.broadcast %6 : vector<16x1xf32> to vector<16x32xf32>
    %16 = arith.subf %0, %15 : vector<16x32xf32>
    %17 = vector.broadcast %1 : vector<1x32xf32> to vector<16x32xf32>
    %18 = arith.mulf %17, %16 : vector<16x32xf32>
    %cst_8 = arith.constant 9.99999997E-7 : f32
    %19 = vector.broadcast %cst_8 : f32 to vector<16x1xf32>
    %20 = arith.addf %14, %19 : vector<16x1xf32>
    %21 = vector.broadcast %20 : vector<16x1xf32> to vector<16x32xf32>
    %22 = arith.divf %18, %21 : vector<16x32xf32>
    %23 = vector.broadcast %2 : vector<1x32xf32> to vector<16x32xf32>
    %24 = arith.addf %22, %23 : vector<16x32xf32>
    %25 = arith.truncf %24 : vector<16x32xf32> to vector<16x32xbf16>
    %c0_9 = arith.constant 0 : index
    %c0_10 = arith.constant 0 : index
    %26 = vector.load %arg4[%c0_9, %c0_10] : memref<32x96xbf16, #tpu.memory_space<vmem>>, vector<32x96xbf16>
    %cst_11 = arith.constant dense<0.000000e+00> : vector<16x96xf32>
    %27 = tpu.matmul %25, %26, %cst_11 {dimension_numbers = #tpu.dot_dimension_numbers<[1], [0], [0], [1], [0, 0, 1, 1], [], []>} : vector<16x32xbf16>, vector<32x96xbf16>, vector<16x96xf32> -> vector<16x96xf32>
    %c0_12 = arith.constant 0 : index
    %c0_13 = arith.constant 0 : index
    %28 = vector.load %arg5[%c0_12, %c0_13] : memref<1x96xf32, #tpu.memory_space<vmem>>, vector<1x96xf32>
    %29 = vector.broadcast %28 : vector<1x96xf32> to vector<16x96xf32>
    %30 = arith.addf %27, %29 : vector<16x96xf32>
    %31 = arith.truncf %30 : vector<16x96xf32> to vector<16x96xbf16>
    %c0_14 = arith.constant 0 : index
    %c0_15 = arith.constant 0 : index
    %32 = vector.load %arg6[%c0_14, %c0_15] : memref<16x96xbf16, #tpu.memory_space<vmem>>, vector<16x96xbf16>
    tpu.vector_store %arg6[%c0_14, %c0_15], %31 {strides = array<i32>} : memref<16x96xbf16, #tpu.memory_space<vmem>>, vector<16x96xbf16>,
    return
  }
  func.func @transform_0(%arg0: i32) -> (i32, i32) {
    %c0_i32 = arith.constant 0 : i32
    %c0_i32_0 = arith.constant 0 : i32
    return %arg0, %c0_i32 : i32, i32
  }
  func.func @transform_1(%arg0: i32) -> (i32, i32) {
    %c0_i32 = arith.constant 0 : i32
    %c0_i32_0 = arith.constant 0 : i32
    %c0_i32_1 = arith.constant 0 : i32
    return %c0_i32, %c0_i32_0 : i32, i32
  }
  func.func @transform_2(%arg0: i32) -> (i32, i32) {
    %c0_i32 = arith.constant 0 : i32
    %c0_i32_0 = arith.constant 0 : i32
    %c0_i32_1 = arith.constant 0 : i32
    return %c0_i32, %c0_i32_0 : i32, i32
  }
  func.func @transform_3(%arg0: i32) -> (i32, i32) {
    %c0_i32 = arith.constant 0 : i32
    %c0_i32_0 = arith.constant 0 : i32
    %c0_i32_1 = arith.constant 0 : i32
    return %c0_i32, %c0_i32_0 : i32, i32
  }
  func.func @transform_4(%arg0: i32) -> (i32, i32) {
    %c0_i32 = arith.constant 0 : i32
    %c0_i32_0 = arith.constant 0 : i32
    %c0_i32_1 = arith.constant 0 : i32
    return %c0_i32, %c0_i32_0 : i32, i32
  }
  func.func @transform_5(%arg0: i32) -> (i32, i32) {
    %c0_i32 = arith.constant 0 : i32
    %c0_i32_0 = arith.constant 0 : i32
    return %arg0, %c0_i32 : i32, i32
  }
}

</mosaic_0001>

<bundles_post_ra>
// kernel: tpu_custom_call.1
= control target key start
LH: loop header
LB: loop body
LE: loop exit
PB: predicated region body
PF: predicated region fallthrough
CT: control target
= control target key end

     0   :  { %10 = vsyncpa [#allocation3], 0  ;;  %s417_s0 = inlined_call_operand.hbm [shape: f32[16,32], index: 0, kind: input, shape index: {}]   ;;  %s418_s1 = inlined_call_operand.vmem [shape: f32[1,32], index: 1, kind: input, shape index: {}]   ;;  %s419_s2 = inlined_call_operand.vmem [shape: f32[1,32], index: 2, kind: input, shape index: {}]   ;;  %s420_s3 = inlined_call_operand.hbm [shape: bf16[32,96], index: 3, kind: input, shape index: {}]   ;;  %s421_s4 = inlined_call_operand.vmem [shape: f32[1,96], index: 4, kind: input, shape index: {}]   ;;  %s422_s5 = inlined_call_operand.hbm [shape: bf16[16,96], index: 5, kind: output, shape index: {}]  }
   0x1   :  { %11 = vsyncpa [#allocation6], 0 }
   0x2   :  { %12 = vsyncpa [#allocation4], 0  ;;  %s322_s18 = smov [#allocation2]   ;;  %s250_s22 = scalar_lea.hbm %s417_s0, 256 }
   0x3   :  { %s18_s19 = sshll.u32 %s322_s18, 4  ;;  %p251_p0 = scmp.ne.s32.totalorder %s417_s0, %s250_s22  ;;  %s19_s19 = int_to_ptr.vmem [resolvable:$true] %s18_s19 }
   0x4   :  { %p254_p1 = scmp.lt.u32.totalorder %s250_s22, %s417_s0 }
   0x6   :  { %p256_p2 = pnand %p254_p1, %p251_p0 }
   0x8   :  { %259 = shalt.err (!%p256_p2)
}
   0x9   :  { %s260_s27 = scalar_lea.vmem %s19_s19, 256  ;;  %p265_p4 = scmp.lt.s32.totalorder %s19_s19, %s19_s19 }
   0xa   :  { %p261_p3 = scmp.ne.s32.totalorder %s19_s19, %s260_s27  ;;  %p266_p5 = scmp.lt.s32.totalorder %s260_s27, %s260_s27 }
   0xc   :  { %p267_p6 = por %p266_p5, %p265_p4 }
   0xe   :  { %p268_p7 = pnand %p267_p6, %p261_p3 }
  0x10   :  { %271 = shalt.err (!%p268_p7)
}
  0x11   :  { %s323_s28 = smov 128   ;;  %s324_s29 = smov 8  }
  0x12   :  { %24 = dma.hbm_to_vmem [thread:$0]  %s417_s0, 256, %s19_s19, [#allocation3], %s323_s28, %s323_s28, %s324_s29  }
  0x13   :  { %s325_s7 = smov [#allocation5]   ;;  %s272_s11 = scalar_lea.hbm %s420_s3, 256 }
  0x14   :  { %s34_s8 = sshll.u32 %s325_s7, 4  ;;  %p273_p8 = scmp.ne.s32.totalorder %s420_s3, %s272_s11  ;;  %s35_s8 = int_to_ptr.vmem [resolvable:$true] %s34_s8 }
  0x15   :  { %p276_p9 = scmp.lt.u32.totalorder %s272_s11, %s420_s3 }
  0x17   :  { %p278_p10 = pnand %p276_p9, %p273_p8 }
  0x19   :  { %281 = shalt.err (!%p278_p10)
}
  0x1a   :  { %s282_s16 = scalar_lea.vmem %s35_s8, 256  ;;  %p287_p12 = scmp.lt.s32.totalorder %s35_s8, %s35_s8 }
  0x1b   :  { %p283_p11 = scmp.ne.s32.totalorder %s35_s8, %s282_s16  ;;  %p288_p13 = scmp.lt.s32.totalorder %s282_s16, %s282_s16 }
  0x1d   :  { %p289_p0 = por %p288_p13, %p287_p12 }
  0x1f   :  { %p290_p1 = pnand %p289_p0, %p283_p11 }
  0x21   :  { %293 = shalt.err (!%p290_p1)
}
  0x22   :  { %s326_s0 = smov 64   ;;  %s327_s17 = smov 4  }
  0x23   :  { %40 = dma.hbm_to_vmem [thread:$0]  %s420_s3, 256, %s35_s8, [#allocation6], %s326_s0, %s326_s0, %s327_s17  }
  0x24   :  { %316 = dma.done.wait [#allocation3], 256  }
  0x25   :  { %317 = vsyncadd [#allocation3], 4294967040 }
  0x26   :  { %318 = dma.done.wait [#allocation6], 256  }
  0x27   :  { %319 = vsyncadd [#allocation6], 4294967040  ;;  %vm54_vm0 = vcmask 261120   ;;  %v50_v0 = vld [vmem:[#allocation2] sm:$0xff]  ;;  %v51_v1 = vld [vmem:[#allocation2 + $0x8] sm:$0xff]  ;;  %v328_v15 = vmov 0.0  }
  0x28   :  { %v55_v2 = vsel %vm54_vm0, %v50_v0, 0.0  ;;  %v58_v3 = vsel %vm54_vm0, %v51_v1, 0.0  ;;  %v240_v14 = vld [vmem:[#allocation5] sm:$0xff]   ;;  %223 = vmatprep.subr.bf16.mxu0 %v328_v15  ;;  %vm329_vm1 = vmmov 0   ;;  %v241_v16 = vld [vmem:[#allocation5 + $0x8] sm:$0xff]   ;;  %vm189_vm6 = vcmask 781312  }
  0x29   :  { %56 = vadd.xlane.f32.xlu0 %v55_v2  ;;  %227 = vmatprep.mubr.msk.bf16.mxu0 %vm329_vm1, %v328_v15  ;;  %v210_v33 = vld [vmem:[%s418_s1] ss:$0 sm:$0xff]  ;;  %s330_s1 = smov [#allocation7]  }
  0x2a   :  { %224 = vmatpush3.bf16.msra.mxu0 %v240_v14  ;;  %v211_v39 = vld [vmem:[%s419_s2] ss:$0 sm:$0xff]  ;;  %s197_s25 = sshll.u32 %s330_s1, 4  ;;  %s198_s25 = int_to_ptr.vmem [resolvable:$true] %s197_s25 }
  0x2b   :  { %225 = vmatprep.subr.bf16.mxu0 %v328_v15  ;;  %v212_v44 = vld [vmem:[%s421_s4] ss:$0 sm:$0xff]  ;;  %s294_s2 = scalar_lea.vmem %s198_s25, 128  ;;  %p299_p3 = scmp.lt.s32.totalorder %s198_s25, %s198_s25 }
  0x2c   :  { %p295_p2 = scmp.ne.s32.totalorder %s198_s25, %s294_s2  ;;  %p300_p4 = scmp.lt.s32.totalorder %s294_s2, %s294_s2 }
  0x2d   :  { %59 = vadd.xlane.f32.xlu0 %v58_v3 }
  0x2e   :  { %226 = vmatpush3.bf16.msra.mxu0 %v241_v16  ;;  %p301_p5 = por %p300_p4, %p299_p3 }
  0x30   :  { %p302_p6 = pnand %p301_p5, %p295_p2 }
  0xb6   :  { %v57_v4 = vpop.xlane.xlu0 %56 }
  0xb7   :  { %v62_v5 = vmul.f32 0.03125, %v57_v4 }
  0xb9   :  { %v64_v6 = vsub.f32 %v50_v0, %v62_v5 }
  0xba   :  { %v60_v7 = vpop.xlane.xlu0 %59 }
  0xbb   :  { %v63_v8 = vmul.f32 0.03125, %v60_v7  ;;  %v66_v9 = vmul.f32 %v64_v6, %v64_v6  ;;  %v97_v35 = vmul.f32 %v210_v33, %v64_v6 }
  0xbd   :  { %v65_v10 = vsub.f32 %v51_v1, %v63_v8  ;;  %v68_v11 = vsel %vm54_vm0, %v66_v9, 0.0 }
  0xbe   :  { %69 = vadd.xlane.f32.xlu1 %v68_v11 }
  0xbf   :  { %v67_v12 = vmul.f32 %v65_v10, %v65_v10  ;;  %v98_v36 = vmul.f32 %v210_v33, %v65_v10 }
  0xc1   :  { %v71_v13 = vsel %vm54_vm0, %v67_v12, 0.0 }
  0xc2   :  { %72 = vadd.xlane.f32.xlu1 %v71_v13 }
 0x14b   :  { %v70_v17 = vpop.xlane.xlu1 %69 }
 0x14c   :  { %v75_v18 = vmul.f32 0.032258064, %v70_v17 }
 0x14e   :  { %242 = vrsqrt.f32 %v75_v18  ;;  %vm79_vm2 = vcmp.eq.f32.partialorder %v75_v18, inf  ;;  %v82_v23 = vand.u32 2147483648, %v75_v18  ;;  %vm81_vm3 = vcmp.eq.f32.partialorder %v75_v18, 0.0 }
 0x14f   :  { %v73_v19 = vpop.xlane.xlu1 %72 }
 0x150   :  { %v76_v20 = vmul.f32 0.032258064, %v73_v19 }
 0x152   :  { %244 = vrsqrt.f32 %v76_v20  ;;  %vm86_vm4 = vcmp.eq.f32.partialorder %v76_v20, inf  ;;  %v89_v29 = vand.u32 2147483648, %v76_v20  ;;  %vm88_vm5 = vcmp.eq.f32.partialorder %v76_v20, 0.0 }
 0x158   :  { %v243_v21 = vpop.eup %242 }
 0x159   :  { %v78_v22 = vmul.f32 %v243_v21, %v75_v18 }
 0x15b   :  { %v80_v24 = vsel %vm79_vm2, %v75_v18, %v78_v22 }
 0x15c   :  { %v245_v25 = vpop.eup %244  ;;  %v83_v26 = vsel %vm81_vm3, %v82_v23, %v80_v24 }
 0x15d   :  { %v99_v27 = vadd.f32 1e-06, %v83_v26  ;;  %v85_v28 = vmul.f32 %v245_v25, %v76_v20 }
 0x15f   :  { %246 = vrcp.f32 %v99_v27  ;;  %v87_v30 = vsel %vm86_vm4, %v76_v20, %v85_v28 }
 0x160   :  { %v90_v31 = vsel %vm88_vm5, %v89_v29, %v87_v30 }
 0x161   :  { %v100_v32 = vadd.f32 1e-06, %v90_v31 }
 0x163   :  { %248 = vrcp.f32 %v100_v32 }
 0x169   :  { %v247_v34 = vpop.eup %246 }
 0x16a   :  { %v102_v37 = vmul.f32 %v247_v34, %v97_v35 }
 0x16c   :  { %v111_v41 = vadd.f32 %v211_v39, %v102_v37 }
 0x16d   :  { %v249_v38 = vpop.eup %248 }
 0x16e   :  { %v104_v40 = vmul.f32 %v249_v38, %v98_v36 }
 0x170   :  { %v112_v42 = vadd.f32 %v211_v39, %v104_v40 }
 0x172   :  { %v113_v43 = vpack.c.bf16 %v112_v42, %v111_v41 }
 0x174   :  { %228 = vmatmul.mubr.msk.bf16.vlgmr.msra.gmra.mrb[0].mxu0 %vm54_vm0, %v113_v43 }
 0x247   :  { %v174_v45 = vpop.f32.mrb[0].mxu0 }
 0x248   :  { %v175_v46 = vadd.f32 %v212_v44, %v174_v45  ;;  %v229_v47 = vpop.f32.mrb[1].mxu0 }
 0x249   :  { %v177_v48 = vpop.f32.mrb[2].mxu0 }
 0x24a   :  { %v218_v49 = vpack.c.bf16 %v175_v46, %v175_v46  ;;  %v178_v50 = vadd.f32 %v212_v44, %v177_v48  ;;  %v230_v51 = vpop.f32.mrb[3].mxu0 }
 0x24c   :  { %v219_v52 = vpack.c.bf16 %v178_v50, %v178_v50  ;;  %190 = vst.msk [vmem:[#allocation7] sm:$0xf] %vm189_vm6, %v218_v49 }
 0x24e   :  { %191 = vst.msk [vmem:[#allocation7 + $0x4] sm:$0xf] %vm189_vm6, %v219_v52 }
 0x24f   :  { %305 = shalt.err (!%p302_p6)
}
 0x250   :  { %s306_s27 = scalar_lea.hbm %s422_s5, 128 }
 0x251   :  { %p307_p7 = scmp.ne.s32.totalorder %s422_s5, %s306_s27  ;;  %p310_p8 = scmp.lt.u32.totalorder %s306_s27, %s422_s5 }
 0x253   :  { %p312_p9 = pnand %p310_p8, %p307_p7 }
 0x255   :  { %315 = shalt.err (!%p312_p9)
}
 0x256   :  { %203 = dma.vmem_to_hbm [thread:$0]  %s198_s25, 128, %s422_s5, [#allocation4], %s326_s0, %s326_s0, %s327_s17  }
 0x257   :  { %320 = dma.done.wait [#allocation4], 128  }
 0x258   :  { %321 = vsyncadd [#allocation4], 4294967168 }
 0x259   :  { %207 = vsyncpa [#allocation3], 1 }
 0x25a   :  { %208 = vsyncpa [#allocation6], 1 }
 0x25b   :  { %209 = vsyncpa [#allocation4], 1 }

</bundles_post_ra>
